<compile_context>
chip_gen: v5e
topology: v5e:2x2
jax: 0.10.0
libtpu: 0.0.40
codegen_flags: <defaults>
</compile_context>

<pallas_src>
import math

import jax
import jax.numpy as jnp
from jax import lax
from jax.experimental import pallas as pl
from jax.experimental.pallas import tpu as pltpu


# -----------------------------------------------------------------------------
# Kernels (grid = D-tiles of the contraction; accumulator lives in VMEM scratch)
# -----------------------------------------------------------------------------

_DN = (((1,), (1,)), ((), ()))   # contract x's dim1 with w's dim1  ->  (N, classes)


def _linear_kernel(x_ref, w_ref, b_ref, o_ref, acc_ref):
    """Single-stream tile:  acc += x_tile @ w_tile^T ;  o = acc + b at the end.

    x_ref:(N,TILE_D) bf16   w_ref:(classes,TILE_D) bf16
    b_ref:(1,classes) f32   o_ref:(N,classes) f32   acc_ref:(N,classes) f32
    """
    k = pl.program_id(0)

    @pl.when(k == 0)
    def _():
        acc_ref[...] = jnp.zeros_like(acc_ref)

    acc_ref[...] += lax.dot_general(
        x_ref[...], w_ref[...], _DN, preferred_element_type=jnp.float32)

    @pl.when(k == pl.num_programs(0) - 1)
    def _():
        o_ref[...] = acc_ref[...] + b_ref[...]


def _linear_both_kernel(x1_ref, x2_ref, w1_ref, w2_ref, b_ref, o_ref, acc_ref):
    """Two-stream tile with the torch channel-concat fused away.

    flatten(cat(x1,x2,dim=1)) == [flatten(x1), flatten(x2)], hence
        o = x1f @ W[:, :D]^T + x2f @ W[:, D:]^T + b
    with the weight halves split on the host (both refs tile-aligned).
    """
    k = pl.program_id(0)

    @pl.when(k == 0)
    def _():
        acc_ref[...] = jnp.zeros_like(acc_ref)

    part = lax.dot_general(x1_ref[...], w1_ref[...], _DN,
                           preferred_element_type=jnp.float32)
    part += lax.dot_general(x2_ref[...], w2_ref[...], _DN,
                            preferred_element_type=jnp.float32)
    acc_ref[...] += part

    @pl.when(k == pl.num_programs(0) - 1)
    def _():
        o_ref[...] = acc_ref[...] + b_ref[...]


# -----------------------------------------------------------------------------
# Tiling / padding helpers
# -----------------------------------------------------------------------------

_MAX_TILE_D = 8192      # bf16 tile ~ (16 sublane x 8192 lane) = 256 KiB per buffer


def _round_up(x, m):
    return (x + m - 1) // m * m


def _choose_tiling(d):
    """Lane tile (multiple of 128) and the padded D it divides."""
    tile = _round_up(d, 128) if d <= _MAX_TILE_D else _MAX_TILE_D
    return tile, _round_up(d, tile)


def _pad_lane(a, d_pad):
    d = a.shape[-1]
    return a if d == d_pad else jnp.pad(a, ((0, 0), (0, d_pad - d)))


def _vmem_limit_bytes(n, classes, tile_d, n_streams):
    sub16 = lambda r: _round_up(r, 16)                 # bf16 sublane padding
    x_tile = sub16(n) * tile_d * 2
    w_tile = sub16(classes) * tile_d * 2
    per_stream = 2 * (x_tile + w_tile)                 # double-buffered pipeline
    small = 4 * sub16(n) * _round_up(classes, 128) * 4 + (1 << 20)
    est = 2 * (n_streams * per_stream + small)         # 2x headroom
    return int(min(max(est, 4 << 20), 32 << 20))


# -----------------------------------------------------------------------------
# Parameters (torch nn.Linear layout (out_features, in_features); default init
# U(-1/sqrt(fan_in), 1/sqrt(fan_in))).  Weights stored bf16, biases f32.
# -----------------------------------------------------------------------------

def init_params(key, *, channels=3, height=16, width=16, classes_num=3):
    d = channels * height * width
    k1, k2, k3, k4 = jax.random.split(key, 4)

    def uni(k, shape, fan_in):
        bound = 1.0 / math.sqrt(fan_in)
        return jax.random.uniform(k, shape, jnp.float32, -bound, bound)

    return {
        "w_in":   uni(k1, (classes_num, d), d).astype(jnp.bfloat16),
        "b_in":   uni(k2, (1, classes_num), d),
        "w_both": uni(k3, (classes_num, 2 * d), 2 * d).astype(jnp.bfloat16),
        "b_both": uni(k4, (1, classes_num), 2 * d),
    }


# -----------------------------------------------------------------------------
# Forward (matches Logistic_two_stream.forward semantics)
# -----------------------------------------------------------------------------

def logistic_two_stream_forward(params, x1, x2, mode):
    """x1, x2: (N, C, H, W), same NCHW layout as the torch module."""
    n = x1.shape[0]
    classes = params["b_in"].shape[-1]

    # Row-major reshape == torch nn.Flatten on contiguous NCHW.
    x1f = x1.reshape(n, -1).astype(jnp.bfloat16)
    x2f = x2.reshape(n, -1).astype(jnp.bfloat16)
    d = x1f.shape[1]
    tile_d, d_pad = _choose_tiling(d)
    n_k = d_pad // tile_d

    x_spec = pl.BlockSpec((n, tile_d), lambda k: (0, k))
    w_spec = pl.BlockSpec((classes, tile_d), lambda k: (0, k))
    b_spec = pl.BlockSpec((1, classes), lambda k: (0, 0))
    o_spec = pl.BlockSpec((n, classes), lambda k: (0, 0))

    if mode in ("rgb", "ir"):
        xf = x1f if mode == "rgb" else x2f
        kernel = _linear_kernel
        ins = (_pad_lane(xf, d_pad), _pad_lane(params["w_in"], d_pad),
               params["b_in"])
        in_specs = [x_spec, w_spec, b_spec]
        n_streams = 1
    elif mode == "both":
        # Host-side split of the (classes, 2D) weight keeps kernel refs aligned.
        w1 = params["w_both"][:, :d]
        w2 = params["w_both"][:, d:]
        kernel = _linear_both_kernel
        ins = (_pad_lane(x1f, d_pad), _pad_lane(x2f, d_pad),
               _pad_lane(w1, d_pad), _pad_lane(w2, d_pad), params["b_both"])
        in_specs = [x_spec, x_spec, w_spec, w_spec, b_spec]
        n_streams = 2
    else:
        print("Please select mode: only rgb / only ir/ both")
        return None

    cost = pl.CostEstimate(
        flops=2 * n * d * classes * n_streams,
        transcendentals=0,
        bytes_accessed=int(sum(a.size * a.dtype.itemsize for a in ins)
                           + n * classes * 4))

    return pl.pallas_call(
        kernel,
        out_shape=jax.ShapeDtypeStruct((n, classes), jnp.float32),
        grid_spec=pltpu.PrefetchScalarGridSpec(
            num_scalar_prefetch=0,
            grid=(n_k,),
            in_specs=in_specs,
            out_specs=o_spec,
            scratch_shapes=[pltpu.VMEM((n, classes), jnp.float32)]),
        compiler_params=pltpu.CompilerParams(
            dimension_semantics=("arbitrary",),
            vmem_limit_bytes=_vmem_limit_bytes(n, classes, tile_d, n_streams)),
        cost_estimate=cost,
    )(*ins)


# -----------------------------------------------------------------------------
# Main
# -----------------------------------------------------------------------------

if __name__ == "__main__":
    key = jax.random.PRNGKey(0)
    kp, k1, k2 = jax.random.split(key, 3)

    # Small stand-in shapes consistent with the module (NCHW, 3 channels).
    # The real module uses 254x254 spatial; that only changes D / tile count.
    N, C, H, W = 2, 3, 16, 16
    params = init_params(kp, channels=C, height=H, width=W, classes_num=3)
    x1 = jax.random.normal(k1, (N, C, H, W), jnp.float32)
    x2 = jax.random.normal(k2, (N, C, H, W), jnp.float32)

    outs = {}
    for mode in ("rgb", "ir", "both"):
        outs[mode] = jax.block_until_ready(
            logistic_two_stream_forward(params, x1, x2, mode))
        assert outs[mode].shape == (N, 3), outs[mode].shape

    # Pure-JAX reference (same bf16 inputs, f32 accumulation, no Pallas).
    x1f = x1.reshape(N, -1).astype(jnp.bfloat16)
    x2f = x2.reshape(N, -1).astype(jnp.bfloat16)
    D = x1f.shape[1]
    dn = (((1,), (1,)), ((), ()))

    def ref_lin(xf, w, b):
        return lax.dot_general(xf, w, dn,
                               preferred_element_type=jnp.float32) + b

    ref_rgb = ref_lin(x1f, params["w_in"], params["b_in"])
    ref_ir = ref_lin(x2f, params["w_in"], params["b_in"])
    ref_both = (ref_lin(x1f, params["w_both"][:, :D], params["b_both"])
                + ref_lin(x2f, params["w_both"][:, D:], jnp.zeros((1, 3),
                                                                  jnp.float32)))

    assert jnp.allclose(outs["rgb"], ref_rgb, rtol=2e-2, atol=2e-2)
    assert jnp.allclose(outs["ir"], ref_ir, rtol=2e-2, atol=2e-2)
    assert jnp.allclose(outs["both"], ref_both, rtol=2e-2, atol=2e-2)
    assert all(bool(jnp.all(jnp.isfinite(v))) for v in outs.values())

    print("KERNEL_OK")
</pallas_src>

<mosaic_0001>
module attributes {stable_mosaic.version = 11 : i64} {
  func.func @_linear_kernel(%arg0: i32, %arg1: memref<2x768xbf16, #tpu.memory_space<vmem>>, %arg2: memref<3x768xbf16, #tpu.memory_space<vmem>>, %arg3: memref<1x3xf32, #tpu.memory_space<vmem>>, %arg4: memref<2x3xf32, #tpu.memory_space<vmem>>, %arg5: memref<2x3xf32, #tpu.memory_space<vmem>>) attributes {dimension_semantics = [#tpu.dimension_semantics<arbitrary>], iteration_bounds = array<i64: 1>, scalar_prefetch = 0 : i64, scratch_operands = 1 : i64, tpu.core_type = #tpu.core_type<tc>, window_params = [{transform_indices = @transform_0, window_bounds = array<i64: 2, 768>}, {transform_indices = @transform_1, window_bounds = array<i64: 3, 768>}, {pipeline_mode = #tpu.pipeline_mode<synchronous>, transform_indices = @transform_2, window_bounds = array<i64: 1, 3>}, {pipeline_mode = #tpu.pipeline_mode<synchronous>, transform_indices = @transform_3, window_bounds = array<i64: 2, 3>}]} {
    %c0_i32 = arith.constant 0 : i32
    %0 = arith.cmpi eq, %arg0, %c0_i32 : i32
    %1 = arith.extui %0 : i1 to i32
    %c0_i32_0 = arith.constant 0 : i32
    %2 = arith.cmpi ne, %1, %c0_i32_0 : i32
    scf.if %2 {
      %cst_10 = arith.constant 0.000000e+00 : f32
      %12 = vector.broadcast %cst_10 : f32 to vector<2x3xf32>
      %c0_11 = arith.constant 0 : index
      %c0_12 = arith.constant 0 : index
      %13 = vector.load %arg5[%c0_11, %c0_12] : memref<2x3xf32, #tpu.memory_space<vmem>>, vector<2x3xf32>
      tpu.vector_store %arg5[%c0_11, %c0_12], %12 {strides = array<i32>} : memref<2x3xf32, #tpu.memory_space<vmem>>, vector<2x3xf32>,
    } else {
    }
    %c0 = arith.constant 0 : index
    %c0_1 = arith.constant 0 : index
    %3 = vector.load %arg5[%c0, %c0_1] : memref<2x3xf32, #tpu.memory_space<vmem>>, vector<2x3xf32>
    %c0_2 = arith.constant 0 : index
    %c0_3 = arith.constant 0 : index
    %4 = vector.load %arg1[%c0_2, %c0_3] : memref<2x768xbf16, #tpu.memory_space<vmem>>, vector<2x768xbf16>
    %c0_4 = arith.constant 0 : index
    %c0_5 = arith.constant 0 : index
    %5 = vector.load %arg2[%c0_4, %c0_5] : memref<3x768xbf16, #tpu.memory_space<vmem>>, vector<3x768xbf16>
    %cst = arith.constant dense<0.000000e+00> : vector<2x3xf32>
    %6 = tpu.matmul %4, %5, %cst {dimension_numbers = #tpu.dot_dimension_numbers<[1], [1], [0], [0], [0, 0, 1, 0], [], []>} : vector<2x768xbf16>, vector<3x768xbf16>, vector<2x3xf32> -> vector<2x3xf32>
    %7 = arith.addf %3, %6 : vector<2x3xf32>
    %c0_6 = arith.constant 0 : index
    %c0_7 = arith.constant 0 : index
    %8 = vector.load %arg5[%c0_6, %c0_7] : memref<2x3xf32, #tpu.memory_space<vmem>>, vector<2x3xf32>
    tpu.vector_store %arg5[%c0_6, %c0_7], %7 {strides = array<i32>} : memref<2x3xf32, #tpu.memory_space<vmem>>, vector<2x3xf32>,
    %c0_i32_8 = arith.constant 0 : i32
    %9 = arith.cmpi eq, %arg0, %c0_i32_8 : i32
    %10 = arith.extui %9 : i1 to i32
    %c0_i32_9 = arith.constant 0 : i32
    %11 = arith.cmpi ne, %10, %c0_i32_9 : i32
    scf.if %11 {
      %c0_10 = arith.constant 0 : index
      %c0_11 = arith.constant 0 : index
      %12 = vector.load %arg5[%c0_10, %c0_11] : memref<2x3xf32, #tpu.memory_space<vmem>>, vector<2x3xf32>
      %c0_12 = arith.constant 0 : index
      %c0_13 = arith.constant 0 : index
      %13 = vector.load %arg3[%c0_12, %c0_13] : memref<1x3xf32, #tpu.memory_space<vmem>>, vector<1x3xf32>
      %14 = vector.broadcast %13 : vector<1x3xf32> to vector<2x3xf32>
      %15 = arith.addf %12, %14 : vector<2x3xf32>
      %c0_14 = arith.constant 0 : index
      %c0_15 = arith.constant 0 : index
      %16 = vector.load %arg4[%c0_14, %c0_15] : memref<2x3xf32, #tpu.memory_space<vmem>>, vector<2x3xf32>
      tpu.vector_store %arg4[%c0_14, %c0_15], %15 {strides = array<i32>} : memref<2x3xf32, #tpu.memory_space<vmem>>, vector<2x3xf32>,
    } else {
    }
    return
  }
  func.func @transform_0(%arg0: i32) -> (i32, i32) {
    %c0_i32 = arith.constant 0 : i32
    %c0_i32_0 = arith.constant 0 : i32
    return %c0_i32, %arg0 : i32, i32
  }
  func.func @transform_1(%arg0: i32) -> (i32, i32) {
    %c0_i32 = arith.constant 0 : i32
    %c0_i32_0 = arith.constant 0 : i32
    return %c0_i32, %arg0 : i32, i32
  }
  func.func @transform_2(%arg0: i32) -> (i32, i32) {
    %c0_i32 = arith.constant 0 : i32
    %c0_i32_0 = arith.constant 0 : i32
    %c0_i32_1 = arith.constant 0 : i32
    return %c0_i32, %c0_i32_0 : i32, i32
  }
  func.func @transform_3(%arg0: i32) -> (i32, i32) {
    %c0_i32 = arith.constant 0 : i32
    %c0_i32_0 = arith.constant 0 : i32
    %c0_i32_1 = arith.constant 0 : i32
    return %c0_i32, %c0_i32_0 : i32, i32
  }
}

</mosaic_0001>

<bundles_post_ra>
// kernel: tpu_custom_call.1
= control target key start
LH: loop header
LB: loop body
LE: loop exit
PB: predicated region body
PF: predicated region fallthrough
CT: control target
= control target key end

     0   :  { %8 = vsyncpa [#allocation4], 0  ;;  %s316_s0 = inlined_call_operand.hbm [shape: bf16[2,768], index: 0, kind: input, shape index: {}]   ;;  %s317_s1 = inlined_call_operand.hbm [shape: bf16[3,768], index: 1, kind: input, shape index: {}]   ;;  %s318_s2 = inlined_call_operand.vmem [shape: f32[1,3], index: 2, kind: input, shape index: {}]   ;;  %s319_s3 = inlined_call_operand.hbm [shape: f32[2,3], index: 3, kind: output, shape index: {}]  }
   0x1   :  { %9 = vsyncpa [#allocation7], 0 }
   0x2   :  { %10 = vsyncpa [#allocation5], 0  ;;  %s16_s14 = sshll.u32 %s316_s0, 4  ;;  %s277_s15 = smov [#allocation3]   ;;  %s17_s14 = int_to_ptr.hbm [resolvable:$true] %s16_s14 }
   0x3   :  { %s18_s16 = sshll.u32 %s277_s15, 4  ;;  %s27_s19 = sshll.u32 %s317_s1, 4  ;;  %s19_s16 = int_to_ptr.vmem [resolvable:$true] %s18_s16  ;;  %s28_s19 = int_to_ptr.hbm [resolvable:$true] %s27_s19 }
   0x4   :  { %21 = dma.hbm_to_vmem [thread:$0]  %s17_s14, 96, %s19_s16, [#allocation4]  }
   0x5   :  { %s278_s20 = smov [#allocation6]  }
   0x6   :  { %s29_s21 = sshll.u32 %s278_s20, 4  ;;  %s30_s21 = int_to_ptr.vmem [resolvable:$true] %s29_s21 }
   0x7   :  { %32 = dma.hbm_to_vmem [thread:$0]  %s28_s19, 192, %s30_s21, [#allocation7]  }
   0x8   :  { %271 = dma.done.wait [#allocation4], 96  }
   0x9   :  { %272 = vsyncadd [#allocation4], 4294967200 }
   0xa   :  { %273 = dma.done.wait [#allocation7], 192  }
   0xb   :  { %274 = vsyncadd [#allocation7], 4294967104  ;;  %v51_v0 = vld [vmem:[#allocation3] sm:$0x3f]  ;;  %v52_v1 = vld [vmem:[#allocation6] sm:$0xff]  ;;  %vm48_vm0 = vcmask 17408  }
   0xc   :  { %55 = vst [vmem:[#allocation1] ss:$9 sm:$0xff] %v51_v0  ;;  %v53_v2 = vld [vmem:[#allocation6 + $0x8] sm:$0xf]  ;;  %v279_v15 = vmov 0.0   ;;  %s280_s22 = smov [#allocation8]  }
   0xd   :  { %49 = vst.msk [vmem:[#allocation2] sm:$0x3] %vm48_vm0, %v279_v15  ;;  %v198_v35 = vld [vmem:[%s318_s2] ss:$0 sm:$0xff]  ;;  %s181_s23 = sshll.u32 %s280_s22, 4  ;;  %s183_s26 = sshll.u32 %s319_s3, 4  ;;  %s182_s23 = int_to_ptr.vmem [resolvable:$true] %s181_s23  ;;  %s184_s26 = int_to_ptr.hbm [resolvable:$true] %s183_s26 }
  0x13   :  { %v56_v3 = vld [vmem:[#allocation1] sm:$0xff]  ;;  %v57_v4 = vld [vmem:[#allocation1 + $0x9] sm:$0xff]  ;;  %v58_v5 = vld [vmem:[#allocation1 + $0x12] sm:$0xff] }
  0x14   :  { %v59_v6 = vld [vmem:[#allocation1 + $0x1b] sm:$0xff]  ;;  %v60_v7 = vld [vmem:[#allocation1 + $0x24] sm:$0xff]  ;;  %v61_v8 = vld [vmem:[#allocation1 + $0x2d] sm:$0xff] }
  0x15   :  { %69 = vst [vmem:[#allocation1] ss:$4 sm:$0xff] %v52_v1  ;;  %v50_v30 = vld [vmem:[#allocation2] sm:$0x3] }
  0x16   :  { %72 = vst [vmem:[#allocation1 + $0x20] ss:$4 sm:$0xff] %v53_v2 }
  0x1c   :  { %v73_v9 = vld.sshfl [vmem:[#allocation1] sm:$0xff pattern:$0x73625140]  ;;  %v74_v10 = vld.sshfl [vmem:[#allocation1 + $0x8] sm:$0xff pattern:$0x73625140] }
  0x1d   :  { %92 = vmatpush.bf16.xpose.msra.mxu0 %v73_v9  ;;  %105 = vmatpush.bf16.xpose.msra.mxu1 %v74_v10  ;;  %v75_v11 = vld.sshfl [vmem:[#allocation1 + $0x10] sm:$0xff pattern:$0x73625140]  ;;  %v76_v12 = vld.sshfl [vmem:[#allocation1 + $0x18] sm:$0xff pattern:$0x73625140] }
  0x1e   :  { %118 = vmatpush.bf16.xpose.msra.mxu2 %v75_v11  ;;  %131 = vmatpush.bf16.xpose.msra.mxu3 %v76_v12  ;;  %v77_v13 = vld.sshfl [vmem:[#allocation1 + $0x20] sm:$0xff pattern:$0x73625140]  ;;  %v78_v14 = vld.sshfl [vmem:[#allocation1 + $0x28] sm:$0xff pattern:$0x73625140] }
  0x24   :  { %93 = vmatmul.bf16.vlgmr.msra.gmra.mxu0 %v56_v3  ;;  %106 = vmatmul.bf16.vlgmr.msra.gmra.mxu1 %v57_v4 }
  0x25   :  { %144 = vmatpush.bf16.xpose.msrb.mxu0 %v77_v13  ;;  %157 = vmatpush.bf16.xpose.msrb.mxu1 %v78_v14 }
  0x26   :  { %119 = vmatmul.bf16.vlgmr.msra.gmra.mxu2 %v58_v5  ;;  %132 = vmatmul.bf16.vlgmr.msra.gmra.mxu3 %v59_v6 }
  0x34   :  { %145 = vmatmul.bf16.vlgmr.msrb.gmra.mxu0 %v60_v7  ;;  %158 = vmatmul.bf16.vlgmr.msrb.gmra.mxu1 %v61_v8 }
  0xa1   :  { %v94_v16 = vpop.f32.mrf.mxu0  ;;  %v107_v17 = vpop.f32.mrf.mxu1 }
  0xa2   :  { %v108_v22 = vadd.f32 %v107_v17, %v94_v16 }
  0xa9   :  { %v120_v18 = vpop.f32.mrf.mxu2  ;;  %v133_v19 = vpop.f32.mrf.mxu3 }
  0xaa   :  { %v96_v20 = vpop.f32.mrf.mxu0  ;;  %v109_v21 = vpop.f32.mrf.mxu1  ;;  %v121_v23 = vadd.f32 %v120_v18, %v108_v22 }
  0xac   :  { %v134_v24 = vadd.f32 %v133_v19, %v121_v23 }
  0xb1   :  { %v122_v25 = vpop.f32.mrf.mxu2  ;;  %v135_v26 = vpop.f32.mrf.mxu3 }
  0xb2   :  { %v146_v27 = vpop.f32.mrf.mxu0  ;;  %v159_v28 = vpop.f32.mrf.mxu1 }
  0xb3   :  { %v147_v29 = vadd.f32 %v146_v27, %v134_v24 }
  0xb5   :  { %v160_v31 = vadd.f32 %v159_v28, %v147_v29 }
  0xb7   :  { %v163_v32 = vadd.f32 %v160_v31, %v50_v30 }
  0xb9   :  { %165 = vst.msk [vmem:[#allocation2] sm:$0x3] %vm48_vm0, %v163_v32 }
  0xba   :  { %v148_v33 = vpop.f32.mrf.mxu0  ;;  %v161_v34 = vpop.f32.mrf.mxu1 }
  0xc0   :  { %v169_v36 = vld [vmem:[#allocation2] sm:$0x3] }
  0xc1   :  { %v174_v37 = vadd.f32 %v198_v35, %v169_v36 }
  0xc3   :  { %175 = vst.msk [vmem:[#allocation8] sm:$0x3] %vm48_vm0, %v174_v37 }
  0xc4   :  { %186 = dma.vmem_to_hbm [thread:$0]  %s182_s23, 32, %s184_s26, [#allocation5]  }
  0xc5   :  { %275 = dma.done.wait [#allocation5], 32  }
  0xc6   :  { %276 = vsyncadd [#allocation5], 4294967264 }
  0xc7   :  { %191 = vsyncpa [#allocation4], 1 }
  0xc8   :  { %192 = vsyncpa [#allocation7], 1 }
  0xc9   :  { %193 = vsyncpa [#allocation5], 1 }

</bundles_post_ra>
